<compile_context>
chip_gen: v5e
topology: v5e:2x2
jax: 0.10.0
libtpu: 0.0.40
codegen_flags: <defaults>
</compile_context>

<pallas_src>
import functools

import jax
import jax.numpy as jnp
from jax import lax
from jax.experimental import pallas as pl
from jax.experimental.pallas import tpu as pltpu


# ---------------------------------------------------------------------------
# Pallas kernel: fused embedding (one-hot MXU matmul) + 4-layer MLP
# ---------------------------------------------------------------------------
def _soft_q_kernel(x_ref, w1c_ref, w1na_ref, w23_ref, vp_ref, o_ref, *, n_cat):
    cdt = w1c_ref.dtype                       # bf16 compute dtype for the MXU
    x = x_ref[...]                            # (tb, n_cat + n_num + n_act) f32
    tb = x.shape[0]
    ncv = w1c_ref.shape[0]                    # n_cat * vocab
    vocab = ncv // n_cat

    ids = x[:, :n_cat].astype(jnp.int32)      # categorical ids (exact ints in f32)
    feats = x[:, n_cat:]                      # numeric features ++ action

    # Fused embedding lookup: build a (tb, n_cat*vocab) one-hot on the VPU and
    # hit the MXU once against the (emb_table @ W1_slice) folded weights.
    # (Out-of-range ids yield a zero row instead of PyTorch's runtime error.)
    lane = lax.broadcasted_iota(jnp.int32, (tb, ncv), 1)
    onehot = jnp.zeros((tb, ncv), jnp.float32)
    for c in range(n_cat):                    # tiny static unroll (n_cat is small)
        onehot = onehot + (lane == (ids[:, c:c + 1] + c * vocab)).astype(jnp.float32)

    b1 = vp_ref[0:1, :]
    b2 = vp_ref[1:2, :]
    b3 = vp_ref[2:3, :]
    w4 = vp_ref[3:4, :]                       # (1, H) f32
    b4 = vp_ref[4:5, 0:1]                     # (1, 1) f32

    def mm(a, w):                             # bf16 MXU, f32 accumulation
        return jnp.dot(a.astype(cdt), w, preferred_element_type=jnp.float32)

    h = jnp.maximum(mm(onehot, w1c_ref[...]) + mm(feats, w1na_ref[...]) + b1, 0.0)
    h = jnp.maximum(mm(h, w23_ref[0]) + b2, 0.0)
    h = jnp.maximum(mm(h, w23_ref[1]) + b3, 0.0)

    # Final (H -> 1) layer computed transposed on the MXU: contract H of w4 (1,H)
    # with H of h (tb,H) -> (1, tb).  The store is a lane-dense full row instead
    # of tb masked single-lane stores into a (tb, 1) column.
    q_row = lax.dot_general(w4, h, (((1,), (1,)), ((), ())),
                            preferred_element_type=jnp.float32)       # (1, tb)
    o_ref[...] = (q_row + b4).astype(o_ref.dtype)


def _round_up(x, m):
    return (x + m - 1) // m * m


def _vmem_limit_bytes(tb, n_feat, w1c, w1na, w23, vp):
    """Explicit scoped-VMEM budget: weights (double-buffered by the default
    pipeline even though the constant index_map avoids re-DMA) + 2x streamed
    input tile + lane-dense output + elementwise scratch, with 2x headroom,
    clamped to [32 MiB, 64 MiB] (v7x physical VMEM is 64 MiB)."""
    lane = lambda n: max(_round_up(n, 128), 128)
    w_bytes = 2 * ((w1c.size + w1na.size + w23.size) * w1c.dtype.itemsize
                   + vp.size * 4)
    io_bytes = 2 * tb * lane(n_feat) * 4 + 2 * 8 * lane(tb) * 4
    h = w23.shape[-1]
    ncv = w1c.shape[0]
    scratch = tb * lane(ncv) * 4 + 6 * tb * lane(h) * 4
    est = w_bytes + io_bytes + scratch
    return int(min(64 << 20, max(32 << 20, 2 * est)))


@functools.partial(jax.jit, static_argnames=("tb", "n_cat"))
def soft_q_mlp(x, w1c, w1na, w23, vp, *, tb, n_cat):
    b_pad, n_feat = x.shape
    assert b_pad % tb == 0
    n_tiles = b_pad // tb

    batch_tile = lambda i: (i, 0)        # streamed / written per grid step
    pinned2 = lambda i: (0, 0)           # constant block index -> stays in VMEM
    pinned3 = lambda i: (0, 0, 0)

    out = pl.pallas_call(
        functools.partial(_soft_q_kernel, n_cat=n_cat),
        out_shape=jax.ShapeDtypeStruct((n_tiles, tb), jnp.float32),
        grid=(n_tiles,),
        in_specs=[
            pl.BlockSpec((tb, n_feat), batch_tile),      # cat-ids ++ num ++ action
            pl.BlockSpec(w1c.shape, pinned2),            # folded emb @ W1 (bf16)
            pl.BlockSpec(w1na.shape, pinned2),           # W1 numeric+action slice
            pl.BlockSpec(w23.shape, pinned3),            # stacked W2, W3
            pl.BlockSpec(vp.shape, pinned2),             # b1,b2,b3,w4row,b4
        ],
        out_specs=pl.BlockSpec((1, tb), batch_tile),     # lane-dense q row per tile
        compiler_params=pltpu.CompilerParams(
            dimension_semantics=("parallel",),           # megacore split on v7x
            vmem_limit_bytes=_vmem_limit_bytes(tb, n_feat, w1c, w1na, w23, vp)),
    )(x, w1c, w1na, w23, vp)
    return out.reshape(b_pad, 1)


# ---------------------------------------------------------------------------
# Parameter construction (PyTorch-style) and packing for the kernel
# ---------------------------------------------------------------------------
def init_params(key, *, num_cat, vocab, emb_dim, num_numeric, num_actions,
                hidden_size, init_w=0.003):
    num_inputs = num_cat * emb_dim + num_numeric
    d_in = num_inputs + num_actions
    keys = jax.random.split(key, 9)

    def linear(kw, kb, fan_in, fan_out, bound=None):
        if bound is None:
            bound = 1.0 / (fan_in ** 0.5)
        w = jax.random.uniform(kw, (fan_in, fan_out), jnp.float32, -bound, bound)
        b = jax.random.uniform(kb, (1, fan_out), jnp.float32, -bound, bound)
        return w, b

    emb_tables = jax.random.normal(keys[0], (num_cat, vocab, emb_dim), jnp.float32)
    w1, b1 = linear(keys[1], keys[2], d_in, hidden_size)
    w2, b2 = linear(keys[3], keys[4], hidden_size, hidden_size)
    w3, b3 = linear(keys[5], keys[6], hidden_size, hidden_size)
    w4, b4 = linear(keys[7], keys[8], hidden_size, 1, bound=init_w)
    return dict(emb_tables=emb_tables, w1=w1, b1=b1, w2=w2, b2=b2, w3=w3, b3=b3,
                w4=w4, b4=b4, num_cat=num_cat, vocab=vocab, emb_dim=emb_dim,
                num_numeric=num_numeric, num_actions=num_actions,
                hidden_size=hidden_size)


def pack_params(params, compute_dtype=jnp.bfloat16):
    n_cat, vocab, emb_dim = params["num_cat"], params["vocab"], params["emb_dim"]
    h = params["hidden_size"]
    w1 = params["w1"]

    # The one-hot folded-embedding trick costs O(n_cat*vocab*H) VMEM and MXU MACs,
    # so it is only used for small categorical vocabularies.
    # TODO(synk): for large vocab, switch to a scalar-prefetch gather of embedding
    # rows (PrefetchScalarGridSpec) and keep W1's embedding slice unfolded.
    assert n_cat * vocab <= 4096, "one-hot folded embedding only for small vocab"

    # Fold each embedding table into its W1 slice (exact in f32):
    #   emb_c(ids) @ W1_slice_c  ==  onehot_c @ (E_c @ W1_slice_c)
    w1c = jnp.concatenate(
        [params["emb_tables"][c] @ w1[c * emb_dim:(c + 1) * emb_dim, :]
         for c in range(n_cat)], axis=0)                     # (n_cat*vocab, H)
    w1na = w1[n_cat * emb_dim:, :]                           # numeric ++ action rows
    w23 = jnp.stack([params["w2"], params["w3"]], axis=0)    # (2, H, H)

    vp = jnp.zeros((8, h), jnp.float32)
    vp = (vp.at[0].set(params["b1"][0]).at[1].set(params["b2"][0])
            .at[2].set(params["b3"][0]).at[3].set(params["w4"][:, 0])
            .at[4].set(jnp.full((h,), params["b4"][0, 0])))

    return dict(w1c=w1c.astype(compute_dtype), w1na=w1na.astype(compute_dtype),
                w23=w23.astype(compute_dtype), vp=vp, n_cat=n_cat, vocab=vocab)


_MAX_TB = 1024


def _choose_tile(b):
    """Padding-aware batch tile: few, large tiles (multiple of 16 rows, <= 1024);
    keep the grid >= 2 and even when the batch is big enough so the ('parallel',)
    axis actually splits across v7x's two TensorCores (no-op on v5e/v6e)."""
    b = max(int(b), 1)
    if b <= 16:
        n_tiles = 1
    else:
        n_tiles = max(2, -(-b // _MAX_TB))
        if n_tiles % 2:
            n_tiles += 1
    tb = _round_up(-(-b // n_tiles), 16)
    return tb, _round_up(b, tb)


def soft_q_forward(packed, state, action):
    """state: (B, n_cat + n_num) f32 (cat cols hold integer ids),
       action: (B, n_act) f32  ->  (B, 1) f32"""
    n_cat = packed["n_cat"]
    b = state.shape[0]
    # Single streamed operand: one concat in the wrapper, one DMA per grid step.
    x = jnp.concatenate([state, action], axis=1).astype(jnp.float32)
    tb, b_pad = _choose_tile(b)
    if b_pad != b:
        x = jnp.pad(x, ((0, b_pad - b), (0, 0)))
    q = soft_q_mlp(x, packed["w1c"], packed["w1na"], packed["w23"], packed["vp"],
                   tb=tb, n_cat=n_cat)
    return q[:b]


# ---------------------------------------------------------------------------
# References: (a) exact mirror of the packed bf16 math, (b) f32 PyTorch semantics
# ---------------------------------------------------------------------------
def soft_q_mirror_ref(packed, state, action):
    n_cat, vocab = packed["n_cat"], packed["vocab"]
    ids = state[:, :n_cat].astype(jnp.int32)
    feats = jnp.concatenate([state[:, n_cat:], action], axis=1)
    ncv = n_cat * vocab
    lane = jnp.arange(ncv, dtype=jnp.int32)[None, :]
    onehot = jnp.zeros((ids.shape[0], ncv), jnp.float32)
    for c in range(n_cat):
        onehot = onehot + (lane == (ids[:, c:c + 1] + c * vocab)).astype(jnp.float32)
    vp = packed["vp"]
    b1, b2, b3, w4, b4 = vp[0:1], vp[1:2], vp[2:3], vp[3:4], vp[4:5, 0:1]
    mm = lambda a, w: jnp.dot(a.astype(jnp.bfloat16), w,
                              preferred_element_type=jnp.float32)
    h = jnp.maximum(mm(onehot, packed["w1c"]) + mm(feats, packed["w1na"]) + b1, 0.0)
    h = jnp.maximum(mm(h, packed["w23"][0]) + b2, 0.0)
    h = jnp.maximum(mm(h, packed["w23"][1]) + b3, 0.0)
    return jnp.sum(h * w4, axis=-1, keepdims=True) + b4


def soft_q_forward_ref(params, state, action):
    n_cat = params["num_cat"]
    ids = state[:, :n_cat].astype(jnp.int32)
    num = state[:, n_cat:]
    embs = [params["emb_tables"][c][ids[:, c]] for c in range(n_cat)]
    x = jnp.concatenate(embs + [num, action], axis=1)
    h = jax.nn.relu(x @ params["w1"] + params["b1"])
    h = jax.nn.relu(h @ params["w2"] + params["b2"])
    h = jax.nn.relu(h @ params["w3"] + params["b3"])
    return h @ params["w4"] + params["b4"]


if __name__ == "__main__":
    B = 2
    NUM_CAT, VOCAB, EMB_DIM = 2, 10, 4
    NUM_NUMERIC, NUM_ACTIONS, HIDDEN = 6, 3, 32

    key = jax.random.PRNGKey(0)
    k_params, k_cat, k_num, k_act = jax.random.split(key, 4)
    params = init_params(k_params, num_cat=NUM_CAT, vocab=VOCAB, emb_dim=EMB_DIM,
                         num_numeric=NUM_NUMERIC, num_actions=NUM_ACTIONS,
                         hidden_size=HIDDEN)
    packed = pack_params(params)

    def make_inputs(kc, kn, ka, batch):
        cat = jax.random.randint(kc, (batch, NUM_CAT), 0, VOCAB).astype(jnp.float32)
        num = jax.random.normal(kn, (batch, NUM_NUMERIC), jnp.float32)
        act = jax.random.normal(ka, (batch, NUM_ACTIONS), jnp.float32)
        return jnp.concatenate([cat, num], axis=1), act

    # Small case (B=2): single grid step, sublane-padded tile.
    state, action = make_inputs(k_cat, k_num, k_act, B)
    q = jax.block_until_ready(soft_q_forward(packed, state, action))
    assert q.shape == (B, 1)
    q_mirror = soft_q_mirror_ref(packed, state, action)
    assert jnp.allclose(q, q_mirror, atol=1e-3, rtol=1e-3)
    # Loose check vs. f32 PyTorch semantics (bounds bf16 weight quantization).
    q_f32 = soft_q_forward_ref(params, state, action)
    assert jnp.allclose(q, q_f32, atol=2e-2, rtol=2e-2)

    # Larger case: exercises the 2-tile grid (padding-aware tb=160), resident
    # weights across grid steps, batch padding, and the lane-dense output path.
    k2 = jax.random.split(jax.random.PRNGKey(0), 3)
    state2, action2 = make_inputs(k2[0], k2[1], k2[2], 300)
    q2 = jax.block_until_ready(soft_q_forward(packed, state2, action2))
    assert q2.shape == (300, 1)
    q2_mirror = soft_q_mirror_ref(packed, state2, action2)
    assert jnp.allclose(q2, q2_mirror, atol=1e-3, rtol=1e-3)

    print("KERNEL_OK")
</pallas_src>

<mosaic_0001>
module attributes {stable_mosaic.version = 11 : i64} {
  func.func @_soft_q_kernel(%arg0: i32, %arg1: memref<16x11xf32, #tpu.memory_space<vmem>>, %arg2: memref<20x32xbf16, #tpu.memory_space<vmem>>, %arg3: memref<9x32xbf16, #tpu.memory_space<vmem>>, %arg4: memref<2x32x32xbf16, #tpu.memory_space<vmem>>, %arg5: memref<8x32xf32, #tpu.memory_space<vmem>>, %arg6: memref<1x16xf32, #tpu.memory_space<vmem>>) attributes {dimension_semantics = [#tpu.dimension_semantics<parallel>], iteration_bounds = array<i64: 1>, scalar_prefetch = 0 : i64, scratch_operands = 0 : i64, tpu.core_type = #tpu.core_type<tc>, window_params = [{transform_indices = @transform_0, window_bounds = array<i64: 16, 11>}, {pipeline_mode = #tpu.pipeline_mode<synchronous>, transform_indices = @transform_1, window_bounds = array<i64: 20, 32>}, {pipeline_mode = #tpu.pipeline_mode<synchronous>, transform_indices = @transform_2, window_bounds = array<i64: 9, 32>}, {pipeline_mode = #tpu.pipeline_mode<synchronous>, transform_indices = @transform_3, window_bounds = array<i64: 2, 32, 32>}, {pipeline_mode = #tpu.pipeline_mode<synchronous>, transform_indices = @transform_4, window_bounds = array<i64: 8, 32>}, {transform_indices = @transform_5, window_bounds = array<i64: 1, 16>}]} {
    %c0 = arith.constant 0 : index
    %c0_0 = arith.constant 0 : index
    %0 = vector.load %arg1[%c0, %c0_0] : memref<16x11xf32, #tpu.memory_space<vmem>>, vector<16x11xf32>
    %1 = vector.extract_strided_slice %0 {offsets = [0, 0], sizes = [16, 2], strides = [1, 1]} : vector<16x11xf32> to vector<16x2xf32>
    %2 = arith.fptosi %1 : vector<16x2xf32> to vector<16x2xi32>
    %3 = vector.extract_strided_slice %0 {offsets = [0, 2], sizes = [16, 9], strides = [1, 1]} : vector<16x11xf32> to vector<16x9xf32>
    %4 = tpu.iota {dimensions = array<i32: 1>} : vector<16x20xi32>
    %cst = arith.constant 0.000000e+00 : f32
    %5 = vector.broadcast %cst : f32 to vector<16x20xf32>
    %6 = vector.extract_strided_slice %2 {offsets = [0, 0], sizes = [16, 1], strides = [1, 1]} : vector<16x2xi32> to vector<16x1xi32>
    %c0_i32 = arith.constant 0 : i32
    %7 = vector.broadcast %c0_i32 : i32 to vector<16x1xi32>
    %8 = arith.addi %6, %7 : vector<16x1xi32>
    %9 = vector.broadcast %8 : vector<16x1xi32> to vector<16x20xi32>
    %10 = arith.cmpi eq, %4, %9 : vector<16x20xi32>
    %11 = arith.extui %10 : vector<16x20xi1> to vector<16x20xi32>
    %12 = arith.sitofp %11 : vector<16x20xi32> to vector<16x20xf32>
    %13 = arith.addf %5, %12 : vector<16x20xf32>
    %14 = vector.extract_strided_slice %2 {offsets = [0, 1], sizes = [16, 1], strides = [1, 1]} : vector<16x2xi32> to vector<16x1xi32>
    %c10_i32 = arith.constant 10 : i32
    %15 = vector.broadcast %c10_i32 : i32 to vector<16x1xi32>
    %16 = arith.addi %14, %15 : vector<16x1xi32>
    %17 = vector.broadcast %16 : vector<16x1xi32> to vector<16x20xi32>
    %18 = arith.cmpi eq, %4, %17 : vector<16x20xi32>
    %19 = arith.extui %18 : vector<16x20xi1> to vector<16x20xi32>
    %20 = arith.sitofp %19 : vector<16x20xi32> to vector<16x20xf32>
    %21 = arith.addf %13, %20 : vector<16x20xf32>
    %c0_1 = arith.constant 0 : index
    %c0_2 = arith.constant 0 : index
    %22 = vector.load %arg5[%c0_1, %c0_2] : memref<8x32xf32, #tpu.memory_space<vmem>>, vector<1x32xf32>
    %c1 = arith.constant 1 : index
    %c0_3 = arith.constant 0 : index
    %23 = vector.load %arg5[%c1, %c0_3] : memref<8x32xf32, #tpu.memory_space<vmem>>, vector<1x32xf32>
    %c2 = arith.constant 2 : index
    %c0_4 = arith.constant 0 : index
    %24 = vector.load %arg5[%c2, %c0_4] : memref<8x32xf32, #tpu.memory_space<vmem>>, vector<1x32xf32>
    %c3 = arith.constant 3 : index
    %c0_5 = arith.constant 0 : index
    %25 = vector.load %arg5[%c3, %c0_5] : memref<8x32xf32, #tpu.memory_space<vmem>>, vector<1x32xf32>
    %c4 = arith.constant 4 : index
    %c0_6 = arith.constant 0 : index
    %26 = vector.load %arg5[%c4, %c0_6] : memref<8x32xf32, #tpu.memory_space<vmem>>, vector<1x1xf32>
    %c0_7 = arith.constant 0 : index
    %c0_8 = arith.constant 0 : index
    %27 = vector.load %arg2[%c0_7, %c0_8] : memref<20x32xbf16, #tpu.memory_space<vmem>>, vector<20x32xbf16>
    %28 = arith.truncf %21 : vector<16x20xf32> to vector<16x20xbf16>
    %cst_9 = arith.constant dense<0.000000e+00> : vector<16x32xf32>
    %29 = tpu.matmul %28, %27, %cst_9 {dimension_numbers = #tpu.dot_dimension_numbers<[1], [0], [0], [1], [0, 0, 1, 1], [], []>} : vector<16x20xbf16>, vector<20x32xbf16>, vector<16x32xf32> -> vector<16x32xf32>
    %c0_10 = arith.constant 0 : index
    %c0_11 = arith.constant 0 : index
    %30 = vector.load %arg3[%c0_10, %c0_11] : memref<9x32xbf16, #tpu.memory_space<vmem>>, vector<9x32xbf16>
    %31 = arith.truncf %3 : vector<16x9xf32> to vector<16x9xbf16>
    %cst_12 = arith.constant dense<0.000000e+00> : vector<16x32xf32>
    %32 = tpu.matmul %31, %30, %cst_12 {dimension_numbers = #tpu.dot_dimension_numbers<[1], [0], [0], [1], [0, 0, 1, 1], [], []>} : vector<16x9xbf16>, vector<9x32xbf16>, vector<16x32xf32> -> vector<16x32xf32>
    %33 = arith.addf %29, %32 : vector<16x32xf32>
    %34 = vector.broadcast %22 : vector<1x32xf32> to vector<16x32xf32>
    %35 = arith.addf %33, %34 : vector<16x32xf32>
    %cst_13 = arith.constant 0.000000e+00 : f32
    %36 = vector.broadcast %cst_13 : f32 to vector<16x32xf32>
    %37 = arith.maximumf %35, %36 : vector<16x32xf32>
    %c0_14 = arith.constant 0 : index
    %c0_15 = arith.constant 0 : index
    %c0_16 = arith.constant 0 : index
    %38 = vector.load %arg4[%c0_14, %c0_15, %c0_16] : memref<2x32x32xbf16, #tpu.memory_space<vmem>>, vector<1x32x32xbf16>
    %39 = vector.shape_cast %38 : vector<1x32x32xbf16> to vector<32x32xbf16>
    %40 = arith.truncf %37 : vector<16x32xf32> to vector<16x32xbf16>
    %cst_17 = arith.constant dense<0.000000e+00> : vector<16x32xf32>
    %41 = tpu.matmul %40, %39, %cst_17 {dimension_numbers = #tpu.dot_dimension_numbers<[1], [0], [0], [1], [0, 0, 1, 1], [], []>} : vector<16x32xbf16>, vector<32x32xbf16>, vector<16x32xf32> -> vector<16x32xf32>
    %42 = vector.broadcast %23 : vector<1x32xf32> to vector<16x32xf32>
    %43 = arith.addf %41, %42 : vector<16x32xf32>
    %cst_18 = arith.constant 0.000000e+00 : f32
    %44 = vector.broadcast %cst_18 : f32 to vector<16x32xf32>
    %45 = arith.maximumf %43, %44 : vector<16x32xf32>
    %c1_19 = arith.constant 1 : index
    %c0_20 = arith.constant 0 : index
    %c0_21 = arith.constant 0 : index
    %46 = vector.load %arg4[%c1_19, %c0_20, %c0_21] : memref<2x32x32xbf16, #tpu.memory_space<vmem>>, vector<1x32x32xbf16>
    %47 = vector.shape_cast %46 : vector<1x32x32xbf16> to vector<32x32xbf16>
    %48 = arith.truncf %45 : vector<16x32xf32> to vector<16x32xbf16>
    %cst_22 = arith.constant dense<0.000000e+00> : vector<16x32xf32>
    %49 = tpu.matmul %48, %47, %cst_22 {dimension_numbers = #tpu.dot_dimension_numbers<[1], [0], [0], [1], [0, 0, 1, 1], [], []>} : vector<16x32xbf16>, vector<32x32xbf16>, vector<16x32xf32> -> vector<16x32xf32>
    %50 = vector.broadcast %24 : vector<1x32xf32> to vector<16x32xf32>
    %51 = arith.addf %49, %50 : vector<16x32xf32>
    %cst_23 = arith.constant 0.000000e+00 : f32
    %52 = vector.broadcast %cst_23 : f32 to vector<16x32xf32>
    %53 = arith.maximumf %51, %52 : vector<16x32xf32>
    %cst_24 = arith.constant dense<0.000000e+00> : vector<1x16xf32>
    %54 = tpu.matmul %25, %53, %cst_24 {dimension_numbers = #tpu.dot_dimension_numbers<[1], [1], [0], [0], [0, 0, 1, 0], [], []>} : vector<1x32xf32>, vector<16x32xf32>, vector<1x16xf32> -> vector<1x16xf32>
    %55 = vector.broadcast %26 : vector<1x1xf32> to vector<1x16xf32>
    %56 = arith.addf %54, %55 : vector<1x16xf32>
    %c0_25 = arith.constant 0 : index
    %c0_26 = arith.constant 0 : index
    %57 = vector.load %arg6[%c0_25, %c0_26] : memref<1x16xf32, #tpu.memory_space<vmem>>, vector<1x16xf32>
    tpu.vector_store %arg6[%c0_25, %c0_26], %56 {strides = array<i32>} : memref<1x16xf32, #tpu.memory_space<vmem>>, vector<1x16xf32>,
    return
  }
  func.func @transform_0(%arg0: i32) -> (i32, i32) {
    %c0_i32 = arith.constant 0 : i32
    %c0_i32_0 = arith.constant 0 : i32
    return %arg0, %c0_i32 : i32, i32
  }
  func.func @transform_1(%arg0: i32) -> (i32, i32) {
    %c0_i32 = arith.constant 0 : i32
    %c0_i32_0 = arith.constant 0 : i32
    %c0_i32_1 = arith.constant 0 : i32
    return %c0_i32, %c0_i32_0 : i32, i32
  }
  func.func @transform_2(%arg0: i32) -> (i32, i32) {
    %c0_i32 = arith.constant 0 : i32
    %c0_i32_0 = arith.constant 0 : i32
    %c0_i32_1 = arith.constant 0 : i32
    return %c0_i32, %c0_i32_0 : i32, i32
  }
  func.func @transform_3(%arg0: i32) -> (i32, i32, i32) {
    %c0_i32 = arith.constant 0 : i32
    %c0_i32_0 = arith.constant 0 : i32
    %c0_i32_1 = arith.constant 0 : i32
    %c0_i32_2 = arith.constant 0 : i32
    return %c0_i32, %c0_i32_0, %c0_i32_1 : i32, i32, i32
  }
  func.func @transform_4(%arg0: i32) -> (i32, i32) {
    %c0_i32 = arith.constant 0 : i32
    %c0_i32_0 = arith.constant 0 : i32
    %c0_i32_1 = arith.constant 0 : i32
    return %c0_i32, %c0_i32_0 : i32, i32
  }
  func.func @transform_5(%arg0: i32) -> (i32, i32) {
    %c0_i32 = arith.constant 0 : i32
    %c0_i32_0 = arith.constant 0 : i32
    return %arg0, %c0_i32 : i32, i32
  }
}

</mosaic_0001>

<bundles_post_ra>
// kernel: soft_q_mlp.1
= control target key start
LH: loop header
LB: loop body
LE: loop exit
PB: predicated region body
PF: predicated region fallthrough
CT: control target
= control target key end

     0   :  { %10 = vsyncpa [#allocation3], 0  ;;  %s638_s0 = inlined_call_operand.hbm [shape: f32[16,11], index: 0, kind: input, shape index: {}]   ;;  %s639_s1 = inlined_call_operand.hbm [shape: bf16[20,32], index: 1, kind: input, shape index: {}]   ;;  %s640_s2 = inlined_call_operand.hbm [shape: bf16[9,32], index: 2, kind: input, shape index: {}]   ;;  %s641_s3 = inlined_call_operand.hbm [shape: bf16[2,32,32], index: 3, kind: input, shape index: {}]   ;;  %s642_s4 = inlined_call_operand.hbm [shape: f32[8,32], index: 4, kind: input, shape index: {}]   ;;  %s643_s5 = inlined_call_operand.hbm [shape: f32[1,16], index: 5, kind: output, shape index: {}]  }
   0x1   :  { %11 = vsyncpa [#allocation6], 0 }
   0x2   :  { %12 = vsyncpa [#allocation9], 0  ;;  %s31_s20 = sshll.u32 %s639_s1, 4  ;;  %s32_s20 = int_to_ptr.hbm [resolvable:$true] %s31_s20 }
   0x3   :  { %13 = vsyncpa [#allocation4], 0  ;;  %s570_s21 = smov [#allocation5]   ;;  %s57_s25 = sshll.u32 %s641_s3, 4  ;;  %s58_s25 = int_to_ptr.hbm [resolvable:$true] %s57_s25 }
   0x4   :  { %s33_s22 = sshll.u32 %s570_s21, 4  ;;  %s571_s26 = smov 64   ;;  %s34_s22 = int_to_ptr.vmem [resolvable:$true] %s33_s22 }
   0x5   :  { %s572_s27 = smov 4   ;;  %s573_s28 = smov [#allocation8]  }
   0x6   :  { %39 = dma.hbm_to_vmem [thread:$0]  %s32_s20, 192, %s34_s22, [#allocation6], %s571_s26, %s571_s26, %s572_s27  }
   0x7   :  { %s59_s29 = sshll.u32 %s573_s28, 4  ;;  %s18_s7 = sshll.u32 %s638_s0, 4  ;;  %s60_s29 = int_to_ptr.vmem [resolvable:$true] %s59_s29  ;;  %s19_s7 = int_to_ptr.hbm [resolvable:$true] %s18_s7 }
   0x8   :  { %65 = dma.hbm_to_vmem [thread:$0]  %s58_s25, 512, %s60_s29, [#allocation9], %s571_s26, %s571_s26, %s572_s27  }
   0x9   :  { %s574_s1 = smov [#allocation2]   ;;  %s44_s3 = sshll.u32 %s640_s2, 4  ;;  %s45_s3 = int_to_ptr.hbm [resolvable:$true] %s44_s3 }
   0xa   :  { %s20_s8 = sshll.u32 %s574_s1, 4  ;;  %s575_s11 = smov 128   ;;  %s21_s8 = int_to_ptr.vmem [resolvable:$true] %s20_s8 }
   0xb   :  { %s576_s12 = smov 8   ;;  %s577_s13 = smov [#allocation7]  }
   0xc   :  { %26 = dma.hbm_to_vmem [thread:$0]  %s19_s7, 256, %s21_s8, [#allocation3], %s575_s11, %s575_s11, %s576_s12  }
   0xd   :  { %s46_s14 = sshll.u32 %s577_s13, 4  ;;  %s71_s0 = sshll.u32 %s642_s4, 4  ;;  %s47_s14 = int_to_ptr.vmem [resolvable:$true] %s46_s14  ;;  %s72_s0 = int_to_ptr.hbm [resolvable:$true] %s71_s0 }
   0xe   :  { %52 = dma.hbm_to_vmem [thread:$0]  %s45_s3, 128, %s47_s14, [#allocation6], %s571_s26, %s571_s26, %s572_s27  }
   0xf   :  { %s578_s17 = smov [#allocation10]  }
  0x10   :  { %s73_s18 = sshll.u32 %s578_s17, 4  ;;  %s74_s18 = int_to_ptr.vmem [resolvable:$true] %s73_s18 }
  0x11   :  { %76 = dma.hbm_to_vmem [thread:$0]  %s72_s0, 128, %s74_s18, [#allocation9]  }
  0x12   :  { %562 = dma.done.wait [#allocation3], 256  }
  0x13   :  { %563 = vsyncadd [#allocation3], 4294967040 }
  0x14   :  { %564 = dma.done.wait [#allocation6], 320  }
  0x15   :  { %565 = vsyncadd [#allocation6], 4294966976 }
  0x16   :  { %566 = dma.done.wait [#allocation9], 640  }
  0x17   :  { %567 = vsyncadd [#allocation9], 4294966656  ;;  %v579_v0 = vmov 0   ;;  %v580_v1 = vmov 1   ;;  %v98_v2 = vld [vmem:[#allocation2] sm:$0xff]  ;;  %v99_v3 = vld [vmem:[#allocation2 + $0x8] sm:$0xff]  ;;  %v102_v28 = vlaneseq }
  0x18   :  { %412 = vset.pattern.permute.xlu0 %v579_v0  ;;  %413 = vset.pattern.permute.xlu1 %v580_v1  ;;  %vm387_vm0 = vcmp.lt.s32.totalorder %v98_v2, 0  ;;  %v388_v4 = vceil.f32 %v98_v2  ;;  %v389_v5 = vfloor.f32 %v98_v2  ;;  %vm392_vm1 = vcmp.lt.s32.totalorder %v99_v3, 0  ;;  %s581_s2 = smov 126   ;;  %v352_v15 = vld [vmem:[#allocation7] sm:$0xf]  ;;  %v381_v27 = vld [vmem:[#allocation5] sm:$0xff] }
  0x19   :  { %414 = vset.pattern.permute.xlu2 %v579_v0  ;;  %v393_v6 = vceil.f32 %v99_v3  ;;  %v394_v7 = vfloor.f32 %v99_v3  ;;  %v145_v8 = vpack.c.bf16 %v99_v3, %v98_v2  ;;  %v382_v16 = vld [vmem:[#allocation7] sm:$0x10]  ;;  %vm158_vm2 = vcmask 1043456   ;;  %v141_v22 = vld [vmem:[#allocation5 + $0x8] sm:$0x3]  ;;  %v384_v42 = vld [vmem:[#allocation8 + $0x8] sm:$0xff] }
  0x1a   :  { %v390_v9 = vsel %vm387_vm0, %v388_v4, %v389_v5  ;;  %v353_v17 = vor.u32 %v382_v16, %v352_v15  ;;  %vm159_vm3 = vcmask 1044480   ;;  %v582_v18 = vmov 65535   ;;  %243 = vmatpush.bf16.msra.mxu2 %v384_v42  ;;  %v383_v43 = vld [vmem:[#allocation8] sm:$0xff]  ;;  %v386_v56 = vld [vmem:[#allocation8 + $0x18] sm:$0xff]  ;;  %v385_v57 = vld [vmem:[#allocation8 + $0x10] sm:$0xff]  ;;  %s584_s4 = smov [#allocation11]  }
  0x1b   :  { %v391_v10 = vcvt.f32.s32 %v390_v9  ;;  %147 = vrot.lane.b32.xlu2 %v145_v8, %s581_s2  ;;  %v395_v11 = vsel %vm392_vm1, %v393_v6, %v394_v7  ;;  %v160_v19 = vsel %vm158_vm2, 4294967295, %v582_v18  ;;  %v184_v23 = vunpack.c.l.b16 %v141_v22  ;;  %v415_v47 = vld [vmem:[#allocation10] ss:$0 sm:$0xff]  ;;  %281 = vmatpush.bf16.msra.mxu3 %v386_v56  ;;  %v416_v59 = vld [vmem:[#allocation10 + $0x1] ss:$0 sm:$0xff]  ;;  %s332_s19 = sshll.u32 %s584_s4, 4  ;;  %s333_s19 = int_to_ptr.vmem [resolvable:$true] %s332_s19 }
  0x1c   :  { %v396_v13 = vcvt.f32.s32 %v395_v11  ;;  %v161_v20 = vsel %vm159_vm3, %v160_v19, 0  ;;  %vm154_vm4 = vcmask 72704   ;;  %vm192_vm5 = vcmask 1041408   ;;  %v138_v2 = vld [vmem:[#allocation10 + $0x4] sm:$0x1]  ;;  %s334_s22 = sshll.u32 %s643_s5, 4  ;;  %s335_s22 = int_to_ptr.hbm [resolvable:$true] %s334_s22 }
  0x1d   :  { %105 = vperm.xlu0 %412, %v391_v10   ;;  %v118_v12 = vadd.s32 10, %v391_v10  ;;  %v163_v21 = vand.u32 %v353_v17, %v161_v20  ;;  %v186_v25 = vpack.c.b16 %v184_v23, %v184_v23  ;;  %v103_v31 = vand.u32 127, %v102_v28  ;;  %v417_v4 = vld [vmem:[#allocation10 + $0x2] ss:$0 sm:$0xff]  ;;  %v137_v10 = vld [vmem:[#allocation10 + $0x3] sm:$0x1] }
  0x1e   :  { %v119_v14 = vadd.s32 10, %v396_v13  ;;  %v583_v33 = vmov 0.0   ;;  %vm188_vm10 = vcmask 162816   ;;  %244 = vmatpush.bf16.msra.mxu2 %v383_v43  ;;  %vm233_vm11 = vcmask 261120  }
  0x1f   :  { %121 = vperm.xlu1 %413, %v118_v12   ;;  %172 = vmatpush.bf16.msra.mxu0 %v163_v21  ;;  %v194_v26 = vsel %vm192_vm5, %v186_v25, 0  ;;  %vm325_vm12 = vcmask 122880  }
  0x20   :  { %202 = vmatpush.bf16.msra.mxu1 %v194_v26  ;;  %282 = vmatpush.bf16.msra.mxu3 %v385_v57 }
  0x23   :  { %293 = vperm.xlu2 %414, %v138_v2  }
  0x24   :  { %203 = vmatpush.bf16.msra.mxu1 %v381_v27 }
  0x25   :  { %108 = vperm.xlu0 %412, %v396_v13  }
  0x27   :  { %124 = vperm.xlu1 %413, %v119_v14  }
  0x75   :  { %v148_v24 = vpop.permute.xlu2 %147 }
  0x76   :  { %354 = vmatmul.msk.bf16.vlgmr.msra.gmra.mxu0 %vm154_vm4, %v148_v24 }
  0x7d   :  { %v294_v11 = vpop.permute.xlu2 %293 }
  0x8f   :  { %v106_v29 = vpop.permute.xlu0 %105 }
  0x90   :  { %vm110_vm6 = vcmp.eq.s32.totalorder %v103_v31, %v106_v29 }
  0x91   :  { %v122_v30 = vpop.permute.xlu1 %121  ;;  %v346_v34 = vsel %vm110_vm6, 1.0, %v583_v33 }
  0x92   :  { %vm126_vm7 = vcmp.eq.s32.totalorder %v103_v31, %v122_v30 }
  0x93   :  { %v348_v35 = vsel %vm126_vm7, 1.0, %v583_v33 }
  0x94   :  { %v132_v39 = vadd.f32 %v348_v35, %v346_v34 }
  0x97   :  { %v109_v32 = vpop.permute.xlu0 %108 }
  0x98   :  { %vm111_vm8 = vcmp.eq.s32.totalorder %v103_v31, %v109_v32 }
  0x99   :  { %v125_v36 = vpop.permute.xlu1 %124  ;;  %v347_v37 = vsel %vm111_vm8, 1.0, %v583_v33 }
  0x9a   :  { %vm127_vm9 = vcmp.eq.s32.totalorder %v103_v31, %v125_v36 }
  0x9b   :  { %v349_v38 = vsel %vm127_vm9, 1.0, %v583_v33 }
  0x9c   :  { %v133_v40 = vadd.f32 %v349_v38, %v347_v37 }
  0x9e   :  { %v142_v41 = vpack.c.bf16 %v133_v40, %v132_v39 }
  0xa0   :  { %359 = vmatmul.msk.bf16.vlgmr.msra.gmra.mxu1 %vm188_vm10, %v142_v41 }
  0xf3   :  { %v174_v44 = vpop.f32.mrf.mxu0 }
  0xfb   :  { %v176_v48 = vpop.f32.mrf.mxu0 }
 0x11d   :  { %v205_v45 = vpop.f32.mrf.mxu1 }
 0x11e   :  { %v206_v46 = vadd.f32 %v205_v45, %v174_v44 }
 0x120   :  { %v211_v50 = vadd.f32 %v415_v47, %v206_v46 }
 0x122   :  { %v213_v53 = vmax.f32 %v211_v50, 0.0 }
 0x125   :  { %v207_v49 = vpop.f32.mrf.mxu1 }
 0x126   :  { %v208_v51 = vadd.f32 %v207_v49, %v176_v48 }
 0x128   :  { %v212_v52 = vadd.f32 %v415_v47, %v208_v51 }
 0x12a   :  { %v214_v54 = vmax.f32 %v212_v52, 0.0 }
 0x12c   :  { %v219_v55 = vpack.c.bf16 %v214_v54, %v213_v53 }
 0x12e   :  { %368 = vmatmul.msk.bf16.vlgmr.msra.gmra.mxu2 %vm233_vm11, %v219_v55 }
 0x1b1   :  { %v246_v58 = vpop.f32.mrf.mxu2 }
 0x1b2   :  { %v247_v60 = vadd.f32 %v416_v59, %v246_v58 }
 0x1b4   :  { %v251_v63 = vmax.f32 %v247_v60, 0.0 }
 0x1b9   :  { %v248_v61 = vpop.f32.mrf.mxu2 }
 0x1ba   :  { %v249_v62 = vadd.f32 %v416_v59, %v248_v61 }
 0x1bc   :  { %v252_v0 = vmax.f32 %v249_v62, 0.0 }
 0x1be   :  { %v258_v1 = vpack.c.bf16 %v252_v0, %v251_v63 }
 0x1c0   :  { %377 = vmatmul.msk.bf16.vlgmr.msra.gmra.mxu3 %vm233_vm11, %v258_v1 }
 0x243   :  { %v284_v3 = vpop.f32.mrf.mxu3 }
 0x244   :  { %v285_v7 = vadd.f32 %v417_v4, %v284_v3 }
 0x246   :  { %v289_v9 = vmax.f32 %v285_v7, 0.0 }
 0x24b   :  { %v286_v5 = vpop.f32.mrf.mxu3 }
 0x24c   :  { %v287_v6 = vadd.f32 %v417_v4, %v286_v5 }
 0x24e   :  { %v290_v8 = vmax.f32 %v287_v6, 0.0 }
 0x250   :  { %378 = vmatpush.xpose.msk.msrb.mxu0 %vm233_vm11, %v290_v8 }
 0x254   :  { %379 = vmatpush.xpose.msk.msrb.mxu0 %vm233_vm11, %v289_v9 }
 0x257   :  { %380 = vmatmul.msk.f32.vlgmr.msrb.gmra.mxu0 %vm233_vm11, %v137_v10 }
 0x2d4   :  { %v322_v12 = vpop.f32.mrf.mxu0 }
 0x2d5   :  { %v323_v13 = vadd.f32 %v322_v12, %v294_v11 }
 0x2d7   :  { %326 = vst.msk [vmem:[#allocation11] sm:$0x1] %vm325_vm12, %v323_v13 }
 0x2d8   :  { %337 = dma.vmem_to_hbm [thread:$0]  %s333_s19, 16, %s335_s22, [#allocation4]  }
 0x2d9   :  { %568 = dma.done.wait [#allocation4], 16  }
 0x2da   :  { %569 = vsyncadd [#allocation4], 4294967280 }
 0x2db   :  { %342 = vsyncpa [#allocation3], 1 }
 0x2dc   :  { %343 = vsyncpa [#allocation6], 1 }
 0x2dd   :  { %344 = vsyncpa [#allocation9], 1 }
 0x2de   :  { %345 = vsyncpa [#allocation4], 1 }

</bundles_post_ra>
